<compile_context>
chip_gen: v5e
topology: v5e:2x2
jax: 0.10.0
libtpu: 0.0.40
codegen_flags: <defaults>
</compile_context>

<pallas_src>
import functools

import jax
import jax.numpy as jnp
from jax import lax
from jax.experimental import pallas as pl
from jax.experimental.pallas import tpu as pltpu

LN_EPS = 1e-5  # PyTorch nn.LayerNorm default


def _embed_kernel(patches_ref, w_ref, b_ref, g1_ref, b1_ref, g2_ref, b2_ref,
                  pos_ref, o_ref, *, inv_pd, inv_e):
    # patches_ref: (rows_per_tile, Pd) slab of fused (batch*patch) rows
    x = patches_ref[...].astype(jnp.float32)

    # LayerNorm over patch_dim — single-pass stats (one sum + one sum-of-sq).
    s = jnp.sum(x, axis=-1, keepdims=True)
    ss = jnp.sum(x * x, axis=-1, keepdims=True)
    mu = s * inv_pd
    var = jnp.maximum(ss * inv_pd - mu * mu, 0.0)
    xn = (x - mu) * lax.rsqrt(var + LN_EPS)
    xn = xn * g1_ref[...] + b1_ref[...]                      # (Tm, Pd)

    # Linear patch_dim -> E_pad on the MXU: bf16 operands, f32 accumulation.
    y = jnp.dot(xn.astype(jnp.bfloat16), w_ref[...],
                preferred_element_type=jnp.float32) + b_ref[...]   # (Tm, E_pad)

    # LayerNorm over the *true* embedding_dim.  Padded lanes of y are exactly
    # zero (zero weight cols + zero bias), so they contribute nothing to the
    # sums; the explicit 1/E divisor gives the correct statistics.
    s2 = jnp.sum(y, axis=-1, keepdims=True)
    ss2 = jnp.sum(y * y, axis=-1, keepdims=True)
    mu2 = s2 * inv_e
    var2 = jnp.maximum(ss2 * inv_e - mu2 * mu2, 0.0)
    yn = (y - mu2) * lax.rsqrt(var2 + LN_EPS)
    yn = yn * g2_ref[...] + b2_ref[...]                      # padded lanes -> 0

    # + spatial positional encoding (padded lanes 0); lane-dense store.
    o_ref[...] = (yn + pos_ref[...]).astype(o_ref.dtype)


def _pad_last(a, to):
    pad = to - a.shape[-1]
    if pad <= 0:
        return a
    return jnp.pad(a, [(0, 0)] * (a.ndim - 1) + [(0, pad)])


def _choose_rows_per_tile(batch, n_patches, target_rows):
    """Rows per grid tile = k * n_patches for a divisor k of batch, so every
    tile covers whole batch elements and the positional slab repeats per tile.
    Respects the (8, 128) sublane block rule."""
    total = batch * n_patches
    legal = []
    for k in range(1, batch + 1):
        if batch % k:
            continue
        t = k * n_patches
        if t == total or t % 8 == 0:
            legal.append(t)
    fitting = [t for t in legal if t <= target_rows]
    return max(fitting) if fitting else min(legal)


def mix_token_embedding_eval(x, params, *, patch_size, row_tile_target=512,
                             out_dtype=jnp.float32):
    """Eval-mode forward of MixTokenEmbedding.

    x: (B, 2, C, H, W) float32 (PyTorch NCHW-style)
    returns: (B, num_patches, embedding_dim) in `out_dtype` (bf16 allowed if
    downstream tolerates it; default f32 to match the module).
    """
    B, M, C, H, W = x.shape
    assert M == 2
    p = patch_size
    h, w = H // p, W // p
    N = h * w
    Pd = C * p * p
    E = params["w"].shape[1]
    E_pad = max(128, ((E + 127) // 128) * 128)     # lane-dense output width

    # ---- glue: member-0 select + Rearrange 'b c (h p1) (w p2) -> b (h w) (p1 p2 c)'
    # TODO(synk): fold this HBM->HBM patchify transpose into the kernel
    #             (memory_space=pl.ANY + strided make_async_copy per patch) or
    #             accept NHWC input to make it reshape-only; it roughly doubles
    #             HBM traffic for this memory-bound op.
    x0 = x[:, 0].reshape(B, C, h, p, w, p)
    x0 = jnp.transpose(x0, (0, 2, 4, 3, 5, 1))     # b h w p1 p2 c
    patches = x0.reshape(B * N, Pd)                # rows fused into matmul M

    rows_per_tile = _choose_rows_per_tile(B, N, row_tile_target)
    k = rows_per_tile // N
    grid = (B * N // rows_per_tile,)

    # ---- params: pad the E axis to E_pad with zeros (padded lanes stay exactly
    # zero through matmul, LN2 and pos add, and are sliced off afterwards).
    w_p = _pad_last(params["w"].astype(jnp.bfloat16), E_pad)        # (Pd, E_pad) bf16
    b_p = _pad_last(params["b"].reshape(1, E).astype(jnp.float32), E_pad)
    g1 = params["ln1_g"].reshape(1, Pd).astype(jnp.float32)
    b1 = params["ln1_b"].reshape(1, Pd).astype(jnp.float32)
    g2 = _pad_last(params["ln2_g"].reshape(1, E).astype(jnp.float32), E_pad)
    b2 = _pad_last(params["ln2_b"].reshape(1, E).astype(jnp.float32), E_pad)
    pos = _pad_last(params["pos"].reshape(N, E).astype(jnp.float32), E_pad)
    pos_tile = jnp.tile(pos, (k, 1))               # (rows_per_tile, E_pad), grid-invariant

    kernel = functools.partial(_embed_kernel, inv_pd=1.0 / Pd, inv_e=1.0 / E)

    # VMEM budget (double-buffered tiles) with headroom; grid-invariant operands
    # use constant index maps so they are only DMA'd once.
    # TODO(synk): at production ViT sizes on v7x, single-buffer the invariant
    #             weight/pos slabs (pipeline_mode=pl.Buffered(1)) to free VMEM
    #             for a larger row tile.
    vmem_est = (2 * rows_per_tile * Pd * 4
                + 2 * Pd * E_pad * 2
                + 2 * rows_per_tile * E_pad * 4      # pos slab
                + 2 * rows_per_tile * E_pad * 4      # output
                + 2 * (2 * Pd + 3 * E_pad) * 4)
    vmem_limit = int(min(max(2 * vmem_est, 16 << 20), 48 << 20))

    out = pl.pallas_call(
        kernel,
        out_shape=jax.ShapeDtypeStruct((B * N, E_pad), out_dtype),
        grid_spec=pltpu.PrefetchScalarGridSpec(
            num_scalar_prefetch=0,
            grid=grid,
            in_specs=[
                pl.BlockSpec((rows_per_tile, Pd), lambda i: (i, 0)),     # patches
                pl.BlockSpec((Pd, E_pad), lambda i: (0, 0)),             # weight (bf16)
                pl.BlockSpec((1, E_pad), lambda i: (0, 0)),              # linear bias
                pl.BlockSpec((1, Pd), lambda i: (0, 0)),                 # ln1 gamma
                pl.BlockSpec((1, Pd), lambda i: (0, 0)),                 # ln1 beta
                pl.BlockSpec((1, E_pad), lambda i: (0, 0)),              # ln2 gamma
                pl.BlockSpec((1, E_pad), lambda i: (0, 0)),              # ln2 beta
                pl.BlockSpec((rows_per_tile, E_pad), lambda i: (0, 0)),  # pos slab
            ],
            out_specs=pl.BlockSpec((rows_per_tile, E_pad), lambda i: (i, 0)),
        ),
        compiler_params=pltpu.CompilerParams(
            dimension_semantics=("parallel",),
            vmem_limit_bytes=vmem_limit,
        ),
    )(patches, w_p, b_p, g1, b1, g2, b2, pos_tile)

    if E_pad != E:
        out = out[:, :E]
    return out.reshape(B, N, E)


def init_params(key, C, H, W, patch_size, embedding_dim):
    p = patch_size
    N = (H // p) * (W // p)
    Pd = C * p * p
    k1, k2, k3, _ = jax.random.split(key, 4)
    scale = 1.0 / jnp.sqrt(Pd)
    return {
        "ln1_g": jnp.ones((Pd,), jnp.float32),
        "ln1_b": jnp.zeros((Pd,), jnp.float32),
        # stored as (in, out) = transpose of PyTorch nn.Linear.weight; bf16 for
        # the MXU path (halves weight DMA bytes and VMEM footprint).
        "w": jax.random.uniform(k1, (Pd, embedding_dim), jnp.float32,
                                -scale, scale).astype(jnp.bfloat16),
        "b": jax.random.uniform(k2, (embedding_dim,), jnp.float32,
                                -scale, scale),
        "ln2_g": jnp.ones((embedding_dim,), jnp.float32),
        "ln2_b": jnp.zeros((embedding_dim,), jnp.float32),
        "pos": jax.random.normal(k3, (1, N, embedding_dim), jnp.float32),
    }


def _reference(x, params, patch_size):
    """Pure-JAX f32 reference (bf16 weight values, f32 math)."""
    B, _, C, H, W = x.shape
    p = patch_size
    h, w = H // p, W // p
    x0 = x[:, 0].reshape(B, C, h, p, w, p)
    x0 = jnp.transpose(x0, (0, 2, 4, 3, 5, 1)).reshape(B, h * w, C * p * p)

    def ln(v, g, b):
        mu = v.mean(-1, keepdims=True)
        var = ((v - mu) ** 2).mean(-1, keepdims=True)
        return (v - mu) / jnp.sqrt(var + LN_EPS) * g + b

    y = ln(x0, params["ln1_g"], params["ln1_b"])
    y = y @ params["w"].astype(jnp.float32) + params["b"]
    y = ln(y, params["ln2_g"], params["ln2_b"])
    return y + params["pos"]


if __name__ == "__main__":
    B, C, H, W = 4, 4, 16, 16
    patch_size = 4
    embedding_dim = 32

    key = jax.random.PRNGKey(0)
    kx, kp = jax.random.split(key)
    x = jax.random.normal(kx, (B, 2, C, H, W), jnp.float32)
    params = init_params(kp, C, H, W, patch_size, embedding_dim)

    # row_tile_target=32 so these toy shapes still exercise a multi-step grid
    # (2 tiles, each covering 2 fused batch elements); production default 512.
    out = mix_token_embedding_eval(x, params, patch_size=patch_size,
                                   row_tile_target=32)
    out = jax.block_until_ready(out)

    ref = _reference(x, params, patch_size)
    N = (H // patch_size) * (W // patch_size)
    assert out.shape == (B, N, embedding_dim)
    # bf16 activations on the MXU (f32 accumulation): compare against the f32
    # reference with a correspondingly loosened tolerance.
    assert jnp.allclose(out, ref, atol=3e-2, rtol=3e-2), "mismatch vs reference"
    print("KERNEL_OK")
</pallas_src>

<mosaic_0001>
module attributes {stable_mosaic.version = 11 : i64} {
  func.func @_embed_kernel(%arg0: i32, %arg1: memref<32x64xf32, #tpu.memory_space<vmem>>, %arg2: memref<64x128xbf16, #tpu.memory_space<vmem>>, %arg3: memref<1x128xf32, #tpu.memory_space<vmem>>, %arg4: memref<1x64xf32, #tpu.memory_space<vmem>>, %arg5: memref<1x64xf32, #tpu.memory_space<vmem>>, %arg6: memref<1x128xf32, #tpu.memory_space<vmem>>, %arg7: memref<1x128xf32, #tpu.memory_space<vmem>>, %arg8: memref<32x128xf32, #tpu.memory_space<vmem>>, %arg9: memref<32x128xf32, #tpu.memory_space<vmem>>) attributes {dimension_semantics = [#tpu.dimension_semantics<parallel>], iteration_bounds = array<i64: 2>, scalar_prefetch = 0 : i64, scratch_operands = 0 : i64, tpu.core_type = #tpu.core_type<tc>, window_params = [{transform_indices = @transform_0, window_bounds = array<i64: 32, 64>}, {pipeline_mode = #tpu.pipeline_mode<synchronous>, transform_indices = @transform_1, window_bounds = array<i64: 64, 128>}, {pipeline_mode = #tpu.pipeline_mode<synchronous>, transform_indices = @transform_2, window_bounds = array<i64: 1, 128>}, {pipeline_mode = #tpu.pipeline_mode<synchronous>, transform_indices = @transform_3, window_bounds = array<i64: 1, 64>}, {pipeline_mode = #tpu.pipeline_mode<synchronous>, transform_indices = @transform_4, window_bounds = array<i64: 1, 64>}, {pipeline_mode = #tpu.pipeline_mode<synchronous>, transform_indices = @transform_5, window_bounds = array<i64: 1, 128>}, {pipeline_mode = #tpu.pipeline_mode<synchronous>, transform_indices = @transform_6, window_bounds = array<i64: 1, 128>}, {pipeline_mode = #tpu.pipeline_mode<synchronous>, transform_indices = @transform_7, window_bounds = array<i64: 32, 128>}, {transform_indices = @transform_8, window_bounds = array<i64: 32, 128>}]} {
    %c0 = arith.constant 0 : index
    %c0_0 = arith.constant 0 : index
    %0 = vector.load %arg1[%c0, %c0_0] : memref<32x64xf32, #tpu.memory_space<vmem>>, vector<32x64xf32>
    %cst = arith.constant dense<0.000000e+00> : vector<32xf32>
    %1 = vector.multi_reduction <add>, %0, %cst [1] : vector<32x64xf32> to vector<32xf32>
    %2 = vector.shape_cast %1 : vector<32xf32> to vector<32x1xf32>
    %3 = arith.mulf %0, %0 : vector<32x64xf32>
    %cst_1 = arith.constant dense<0.000000e+00> : vector<32xf32>
    %4 = vector.multi_reduction <add>, %3, %cst_1 [1] : vector<32x64xf32> to vector<32xf32>
    %5 = vector.shape_cast %4 : vector<32xf32> to vector<32x1xf32>
    %cst_2 = arith.constant 1.562500e-02 : f32
    %6 = vector.broadcast %cst_2 : f32 to vector<32x1xf32>
    %7 = arith.mulf %2, %6 : vector<32x1xf32>
    %cst_3 = arith.constant 1.562500e-02 : f32
    %8 = vector.broadcast %cst_3 : f32 to vector<32x1xf32>
    %9 = arith.mulf %5, %8 : vector<32x1xf32>
    %10 = arith.mulf %7, %7 : vector<32x1xf32>
    %11 = arith.subf %9, %10 : vector<32x1xf32>
    %cst_4 = arith.constant 0.000000e+00 : f32
    %12 = vector.broadcast %cst_4 : f32 to vector<32x1xf32>
    %13 = arith.maximumf %11, %12 : vector<32x1xf32>
    %14 = vector.broadcast %7 : vector<32x1xf32> to vector<32x64xf32>
    %15 = arith.subf %0, %14 : vector<32x64xf32>
    %cst_5 = arith.constant 9.99999974E-6 : f32
    %16 = vector.broadcast %cst_5 : f32 to vector<32x1xf32>
    %17 = arith.addf %13, %16 : vector<32x1xf32>
    %18 = math.rsqrt %17 : vector<32x1xf32>
    %19 = vector.broadcast %18 : vector<32x1xf32> to vector<32x64xf32>
    %20 = arith.mulf %15, %19 : vector<32x64xf32>
    %c0_6 = arith.constant 0 : index
    %c0_7 = arith.constant 0 : index
    %21 = vector.load %arg4[%c0_6, %c0_7] : memref<1x64xf32, #tpu.memory_space<vmem>>, vector<1x64xf32>
    %22 = vector.broadcast %21 : vector<1x64xf32> to vector<32x64xf32>
    %23 = arith.mulf %20, %22 : vector<32x64xf32>
    %c0_8 = arith.constant 0 : index
    %c0_9 = arith.constant 0 : index
    %24 = vector.load %arg5[%c0_8, %c0_9] : memref<1x64xf32, #tpu.memory_space<vmem>>, vector<1x64xf32>
    %25 = vector.broadcast %24 : vector<1x64xf32> to vector<32x64xf32>
    %26 = arith.addf %23, %25 : vector<32x64xf32>
    %27 = arith.truncf %26 : vector<32x64xf32> to vector<32x64xbf16>
    %c0_10 = arith.constant 0 : index
    %c0_11 = arith.constant 0 : index
    %28 = vector.load %arg2[%c0_10, %c0_11] : memref<64x128xbf16, #tpu.memory_space<vmem>>, vector<64x128xbf16>
    %cst_12 = arith.constant dense<0.000000e+00> : vector<32x128xf32>
    %29 = tpu.matmul %27, %28, %cst_12 {dimension_numbers = #tpu.dot_dimension_numbers<[1], [0], [0], [1], [0, 0, 1, 1], [], []>} : vector<32x64xbf16>, vector<64x128xbf16>, vector<32x128xf32> -> vector<32x128xf32>
    %c0_13 = arith.constant 0 : index
    %c0_14 = arith.constant 0 : index
    %30 = vector.load %arg3[%c0_13, %c0_14] : memref<1x128xf32, #tpu.memory_space<vmem>>, vector<1x128xf32>
    %31 = vector.broadcast %30 : vector<1x128xf32> to vector<32x128xf32>
    %32 = arith.addf %29, %31 : vector<32x128xf32>
    %cst_15 = arith.constant dense<0.000000e+00> : vector<32xf32>
    %33 = vector.multi_reduction <add>, %32, %cst_15 [1] : vector<32x128xf32> to vector<32xf32>
    %34 = vector.shape_cast %33 : vector<32xf32> to vector<32x1xf32>
    %35 = arith.mulf %32, %32 : vector<32x128xf32>
    %cst_16 = arith.constant dense<0.000000e+00> : vector<32xf32>
    %36 = vector.multi_reduction <add>, %35, %cst_16 [1] : vector<32x128xf32> to vector<32xf32>
    %37 = vector.shape_cast %36 : vector<32xf32> to vector<32x1xf32>
    %cst_17 = arith.constant 3.125000e-02 : f32
    %38 = vector.broadcast %cst_17 : f32 to vector<32x1xf32>
    %39 = arith.mulf %34, %38 : vector<32x1xf32>
    %cst_18 = arith.constant 3.125000e-02 : f32
    %40 = vector.broadcast %cst_18 : f32 to vector<32x1xf32>
    %41 = arith.mulf %37, %40 : vector<32x1xf32>
    %42 = arith.mulf %39, %39 : vector<32x1xf32>
    %43 = arith.subf %41, %42 : vector<32x1xf32>
    %cst_19 = arith.constant 0.000000e+00 : f32
    %44 = vector.broadcast %cst_19 : f32 to vector<32x1xf32>
    %45 = arith.maximumf %43, %44 : vector<32x1xf32>
    %46 = vector.broadcast %39 : vector<32x1xf32> to vector<32x128xf32>
    %47 = arith.subf %32, %46 : vector<32x128xf32>
    %cst_20 = arith.constant 9.99999974E-6 : f32
    %48 = vector.broadcast %cst_20 : f32 to vector<32x1xf32>
    %49 = arith.addf %45, %48 : vector<32x1xf32>
    %50 = math.rsqrt %49 : vector<32x1xf32>
    %51 = vector.broadcast %50 : vector<32x1xf32> to vector<32x128xf32>
    %52 = arith.mulf %47, %51 : vector<32x128xf32>
    %c0_21 = arith.constant 0 : index
    %c0_22 = arith.constant 0 : index
    %53 = vector.load %arg6[%c0_21, %c0_22] : memref<1x128xf32, #tpu.memory_space<vmem>>, vector<1x128xf32>
    %54 = vector.broadcast %53 : vector<1x128xf32> to vector<32x128xf32>
    %55 = arith.mulf %52, %54 : vector<32x128xf32>
    %c0_23 = arith.constant 0 : index
    %c0_24 = arith.constant 0 : index
    %56 = vector.load %arg7[%c0_23, %c0_24] : memref<1x128xf32, #tpu.memory_space<vmem>>, vector<1x128xf32>
    %57 = vector.broadcast %56 : vector<1x128xf32> to vector<32x128xf32>
    %58 = arith.addf %55, %57 : vector<32x128xf32>
    %c0_25 = arith.constant 0 : index
    %c0_26 = arith.constant 0 : index
    %59 = vector.load %arg8[%c0_25, %c0_26] : memref<32x128xf32, #tpu.memory_space<vmem>>, vector<32x128xf32>
    %60 = arith.addf %58, %59 : vector<32x128xf32>
    %c0_27 = arith.constant 0 : index
    %c0_28 = arith.constant 0 : index
    %61 = vector.load %arg9[%c0_27, %c0_28] : memref<32x128xf32, #tpu.memory_space<vmem>>, vector<32x128xf32>
    tpu.vector_store %arg9[%c0_27, %c0_28], %60 {strides = array<i32>} : memref<32x128xf32, #tpu.memory_space<vmem>>, vector<32x128xf32>,
    return
  }
  func.func @transform_0(%arg0: i32) -> (i32, i32) {
    %c0_i32 = arith.constant 0 : i32
    %c0_i32_0 = arith.constant 0 : i32
    return %arg0, %c0_i32 : i32, i32
  }
  func.func @transform_1(%arg0: i32) -> (i32, i32) {
    %c0_i32 = arith.constant 0 : i32
    %c0_i32_0 = arith.constant 0 : i32
    %c0_i32_1 = arith.constant 0 : i32
    return %c0_i32, %c0_i32_0 : i32, i32
  }
  func.func @transform_2(%arg0: i32) -> (i32, i32) {
    %c0_i32 = arith.constant 0 : i32
    %c0_i32_0 = arith.constant 0 : i32
    %c0_i32_1 = arith.constant 0 : i32
    return %c0_i32, %c0_i32_0 : i32, i32
  }
  func.func @transform_3(%arg0: i32) -> (i32, i32) {
    %c0_i32 = arith.constant 0 : i32
    %c0_i32_0 = arith.constant 0 : i32
    %c0_i32_1 = arith.constant 0 : i32
    return %c0_i32, %c0_i32_0 : i32, i32
  }
  func.func @transform_4(%arg0: i32) -> (i32, i32) {
    %c0_i32 = arith.constant 0 : i32
    %c0_i32_0 = arith.constant 0 : i32
    %c0_i32_1 = arith.constant 0 : i32
    return %c0_i32, %c0_i32_0 : i32, i32
  }
  func.func @transform_5(%arg0: i32) -> (i32, i32) {
    %c0_i32 = arith.constant 0 : i32
    %c0_i32_0 = arith.constant 0 : i32
    %c0_i32_1 = arith.constant 0 : i32
    return %c0_i32, %c0_i32_0 : i32, i32
  }
  func.func @transform_6(%arg0: i32) -> (i32, i32) {
    %c0_i32 = arith.constant 0 : i32
    %c0_i32_0 = arith.constant 0 : i32
    %c0_i32_1 = arith.constant 0 : i32
    return %c0_i32, %c0_i32_0 : i32, i32
  }
  func.func @transform_7(%arg0: i32) -> (i32, i32) {
    %c0_i32 = arith.constant 0 : i32
    %c0_i32_0 = arith.constant 0 : i32
    %c0_i32_1 = arith.constant 0 : i32
    return %c0_i32, %c0_i32_0 : i32, i32
  }
  func.func @transform_8(%arg0: i32) -> (i32, i32) {
    %c0_i32 = arith.constant 0 : i32
    %c0_i32_0 = arith.constant 0 : i32
    return %arg0, %c0_i32 : i32, i32
  }
}

</mosaic_0001>

<bundles_post_ra>
// kernel: tpu_custom_call.1
= control target key start
LH: loop header
LB: loop body
LE: loop exit
PB: predicated region body
PF: predicated region fallthrough
CT: control target
= control target key end

     0   :  { %s1395_s0 = inlined_call_operand.hbm [shape: f32[64,64], index: 0, kind: input, shape index: {}]   ;;  %s1396_s1 = inlined_call_operand.hbm [shape: bf16[64,128], index: 1, kind: input, shape index: {}]   ;;  %s1397_s2 = inlined_call_operand.vmem [shape: f32[1,128], index: 2, kind: input, shape index: {}]   ;;  %s1398_s3 = inlined_call_operand.vmem [shape: f32[1,64], index: 3, kind: input, shape index: {}]   ;;  %s1399_s4 = inlined_call_operand.vmem [shape: f32[1,64], index: 4, kind: input, shape index: {}]   ;;  %s1400_s5 = inlined_call_operand.vmem [shape: f32[1,128], index: 5, kind: input, shape index: {}]   ;;  %s1401_s6 = inlined_call_operand.vmem [shape: f32[1,128], index: 6, kind: input, shape index: {}]   ;;  %s1402_s7 = inlined_call_operand.hbm [shape: f32[32,128], index: 7, kind: input, shape index: {}]   ;;  %s1403_s8 = inlined_call_operand.hbm [shape: f32[64,128], index: 8, kind: output, shape index: {}]  }
   0x1   :  { %1406 = sst [smem:[#allocation12_spill]] %s1396_s1 }
   0x2   :  { %1407 = sst [smem:[#allocation13_spill]] %s1402_s7 }
   0x3   :  { %13 = vsyncpa [#allocation3], 0 }
   0x4   :  { %15 = vsyncpa [#allocation3 + $0x1], 0 }
   0x5   :  { %16 = vsyncpa [#allocation6], 0 }
   0x6   :  { %17 = vsyncpa [#allocation4], 0 }
   0x7   :  { %19 = vsyncpa [#allocation4 + $0x1], 0  ;;  %s1129_s27 = smov 0   ;;  %s1131_s28 = smov 0  }
   0x8   :  { %s1133_s29 = smov 0   ;;  %s1135_s30 = smov 0  }
   0x9 LB: > { %s1150_s9 = sadd.s32 4294967295, %s1074_s30   ;;  %s774_s10 = sadd.s32 4294967294, %s1074_s30   ;;  %s1074_s30 = sphi %s1135_s30, %s1421_s30   ;;  %s1070_s29 = sphi %s1133_s29, %s1420_s29   ;;  %s1066_s28 = sphi %s1131_s28, %s1419_s28   ;;  %s1062_s27 = sphi %s1129_s27, %s1418_s27  }
   0xa   : > { %p45_p0 = scmp.ne.s32.totalorder %s1066_s28, %s1062_s27  ;;  %p46_p1 = scmp.eq.s32.totalorder %s1150_s9, 0 }
   0xb   : > { %p216_p2 = scmp.eq.s32.totalorder %s1150_s9, 1  ;;  %p222_p3 = scmp.eq.s32.totalorder %s774_s10, 1 }
   0xc   : > { %p1159_p4 = por %p46_p1, %p45_p0  ;;  %p775_p5 = scmp.ge.s32.totalorder %s1074_s30, 1 }
   0xd   : > { %p1164_p6 = por %p222_p3, %p45_p0  ;;  %p229_p7 = scmp.lt.s32.totalorder %s1074_s30, 3 }
   0xe   : > { %s1410_s1 = sld [smem:[#allocation12_spill]]  ;;  %s1076_s17 = smov [#allocation5]  }
   0xf   : > { %p1172_p8 = pnand %p775_p5, %p229_p7  ;;  %s242_s18 = sshll.u32 %s1076_s17, 4  ;;  %s243_s18 = int_to_ptr.vmem [resolvable:$true] %s242_s18 }
  0x10   : > { %s1412_s7 = sld [smem:[#allocation13_spill]]  ;;  %s1077_s22 = smov 64  }
  0x11   : > { %p832_p9 = pneg %p1172_p8  ;;  %s1078_s23 = smov 4  }
  0x12   : > { %s1079_s24 = smov [#allocation7]   ;;  %s1404_s26 = smov 128  }
  0x13   : > { %p833_p10 = pnand %p832_p9, %p46_p1  ;;  %s271_s25 = sshll.u32 %s1079_s24, 4  ;;  %s272_s25 = int_to_ptr.vmem [resolvable:$true] %s271_s25 }
  0x14   : > { %s240_s15 = sshll.u32 %s1410_s1, 4  ;;  %s1405_s10 = smov 8   ;;  %s241_s15 = int_to_ptr.hbm [resolvable:$true] %s240_s15 }
  0x15   : > { %835 = dma.hbm_to_vmem [thread:$0]  (!%p833_p10), %s241_s15, 512, %s243_s18, [#allocation6], %s1077_s22, %s1077_s22, %s1078_s23  }
  0x16   : > { %s269_s21 = sshll.u32 %s1412_s7, 4  ;;  %s1188_s13 = sadd.s32 1, %s1074_s30   ;;  %s270_s21 = int_to_ptr.hbm [resolvable:$true] %s269_s21 }
  0x17   : > { %838 = dma.hbm_to_vmem [thread:$0]  (!%p833_p10), %s270_s21, 512, %s272_s25, [#allocation6], %s1404_s26, %s1404_s26, %s1405_s10  }
  0x18   : > { %s29_s14 = ssub.s32 %s1074_s30, %s1188_s13  ;;  %s32_s17 = sadd.s32 1, %s1070_s29 }
  0x19   : > { %p30_p12 = scmp.eq.s32.totalorder %s29_s14, 0  ;;  %p39_p13 = scmp.ne.s32.totalorder %s1070_s29, %s1066_s28 }
  0x1a   : > { %p40_p0 = scmp.eq.s32.totalorder %s1074_s30, 0  ;;  %p849_p7 = scmp.lt.s32.totalorder %s1074_s30, 2 }
  0x1b   : > { %s1197_s15 = scalar_select %p30_p12, %s1070_s29, %s32_s17  }
  0x1c   : > { %p41_p3 = por %p40_p0, %p39_p13  ;;  %p1201_p5 = por %p216_p2, %p39_p13 }
  0x1d   : > { %s285_s19 = sand.u32 1, %s1070_s29   ;;  %s810_s21 = sshll.u32 %s1074_s30, 5 }
  0x1e   : > { %s779_s20 = sshll.u32 %s285_s19, 5  ;;  %s294_s24 = scalar_lea.hbm %s1395_s0, %s810_s21 }
  0x1f   : > { %s289_s25 = scalar_lea.vmem [#allocation2], %s779_s20  ;;  %s295_s26 = sshll.u32 %s294_s24, 4  ;;  %s296_s26 = int_to_ptr.hbm [resolvable:$true] %s295_s26 }
  0x20   : > { %s297_s14 = sshll.u32 %s289_s25, 4  ;;  %p1211_p9 = pnand %p849_p7, %p41_p3  ;;  %s298_s14 = int_to_ptr.vmem [resolvable:$true] %s297_s14 }
  0x21   : > { %s286_s10 = scalar_lea.sflag [#allocation3], %s285_s19  ;;  %s974_s1 = sshra.s32 %s296_s26, 4  ;;  %s975_s1 = int_to_ptr.hbm [resolvable:$true] %s974_s1 }
  0x22   : > { %s976_s7 = scalar_lea.hbm %s975_s1, 32  ;;  %p978_p10 = pneg %p1211_p9 }
  0x23   : > { %p977_p2 = scmp.ne.s32.totalorder %s975_s1, %s976_s7  ;;  %s981_s22 = scalar_lea.hbm %s1395_s0, 64 }
  0x24   : > { %p982_p0 = scmp.lt.s32.totalorder %s975_s1, %s1395_s0  ;;  %p983_p3 = scmp.lt.s32.totalorder %s981_s22, %s976_s7 }
  0x25   : > { %p979_p12 = pnand %p978_p10, %p977_p2 }
  0x26   : > { %p984_p7 = por %p983_p3, %p982_p0 }
  0x27   : > { %p980_p13 = pneg %p979_p12 }
  0x29   : > { %p985_p11 = pnand %p984_p7, %p980_p13 }
  0x2b   : > { %988 = shalt.err (!%p985_p11)
}
  0x2c   : > { %s1415_s19 = smov 8   ;;  %s1416_s25 = smov 128  }
  0x2d   : > { %842 = dma.hbm_to_vmem [thread:$0]  (!%p1211_p9), %s296_s26, 512, %s298_s14, %s286_s10, %s1416_s25, %s1416_s25, %s1415_s19  }
  0x2e   : > { %309 = sbr.rel (%p1172_p8) target bundleno = 521 (0x209), region = 52  ;;  %s1231_s21 = sand.u32 (!%p1172_p8), 1, %s1066_s28  }
  0x2f   : > { %s783_s1 = sshll.u32 (!%p1172_p8), %s1231_s21, 5  ;;  %s312_s7 = scalar_lea.sflag (!%p1172_p8), [#allocation3], %s1231_s21 }
  0x30   : > { %s315_s20 = scalar_lea.vmem (!%p1172_p8), [#allocation2], %s783_s1 }
  0x33   : > { %1049 = dma.done.wait (%p1159_p4), %s312_s7, 512  }
  0x34   : > { %1051 = vsyncadd (%p1159_p4), %s312_s7, 4294966784 }
  0x35   : > { %1053 = dma.done.wait (%p46_p1), [#allocation6], 1024  }
  0x36   : > { %1055 = vsyncadd (%p46_p1), [#allocation6], 4294966272  ;;  %vm366_vm0 = vcmask 523264   ;;  %v1245_v0 = vld [vmem:[%s315_s20 + $0x10] sm:$0xff]  ;;  %v1247_v1 = vld [vmem:[%s315_s20] sm:$0xff]  ;;  %s1349_s25 = scalar_lea.vmem [#allocation8], %s783_s1 }
  0x37   : > { %v373_v2 = vsel %vm366_vm0, %v1245_v0, 0.0  ;;  %v367_v3 = vsel %vm366_vm0, %v1247_v1, 0.0  ;;  %v379_v4 = vmul.f32 %v1247_v1, %v1247_v1  ;;  %v1255_v5 = vld [vmem:[%s315_s20 + $0x8] sm:$0xff]  ;;  %v1258_v7 = vld [vmem:[%s315_s20 + $0x18] sm:$0xff]  ;;  %v381_v13 = vmul.f32 %v1245_v0, %v1245_v0  ;;  %v813_v20 = vld [vmem:[#allocation5 + $0x10] sm:$0xff]  ;;  %s815_s1 = sshll.u32 %s1150_s9, 5 }
  0x38   : > { %374 = vadd.xlane.f32.xlu1 %v373_v2  ;;  %368 = vadd.xlane.f32.xlu0 %v367_v3  ;;  %v380_v8 = vmul.f32 %v1255_v5, %v1255_v5  ;;  %v376_v9 = vsel %vm366_vm0, %v1258_v7, 0.0  ;;  %v370_v10 = vsel %vm366_vm0, %v1255_v5, 0.0  ;;  %v382_v12 = vmul.f32 %v1258_v7, %v1258_v7  ;;  %v814_v16 = vld [vmem:[#allocation5 + $0x18] sm:$0xff]  ;;  %v812_v24 = vld [vmem:[#allocation5 + $0x8] sm:$0xff]  ;;  %v811_v30 = vld [vmem:[#allocation5] sm:$0xff]  ;;  %s678_s11 = scalar_lea.hbm %s1403_s8, %s815_s1  ;;  %s679_s9 = sshll.u32 %s1349_s25, 4  ;;  %s680_s9 = int_to_ptr.vmem [resolvable:$true] %s679_s9 }
  0x39   : > { %v383_v6 = vsel %vm366_vm0, %v379_v4, 0.0  ;;  %v389_v15 = vsel %vm366_vm0, %v381_v13, 0.0  ;;  %531 = vmatpush.bf16.msra.mxu0 %v814_v16  ;;  %816 = vmatpush.bf16.msra.mxu1 %v814_v16  ;;  %s681_s16 = sshll.u32 %s678_s11, 4  ;;  %s667_s26 = scalar_lea.sflag [#allocation4], %s1231_s21  ;;  %s682_s16 = int_to_ptr.hbm [resolvable:$true] %s681_s16 }
  0x3a   : > { %384 = vadd.xlane.f32.xlu2 %v383_v6  ;;  %v386_v11 = vsel %vm366_vm0, %v380_v8, 0.0  ;;  %v392_v14 = vsel %vm366_vm0, %v382_v12, 0.0  ;;  %s1018_s10 = sshra.s32 %s682_s16, 4  ;;  %s1024_s23 = scalar_lea.hbm %s1403_s8, 64  ;;  %s1019_s10 = int_to_ptr.hbm [resolvable:$true] %s1018_s10 }
  0x3b   : > { %s1020_s14 = scalar_lea.hbm %s1019_s10, 32  ;;  %p1025_p11 = scmp.lt.s32.totalorder %s1019_s10, %s1403_s8 }
  0x3c   : > { %p1021_p1 = scmp.ne.s32.totalorder %s1019_s10, %s1020_s14  ;;  %p1026_p9 = scmp.lt.s32.totalorder %s1024_s23, %s1020_s14 }
  0x3d   : > { %532 = vmatpush.bf16.msra.mxu0 %v813_v20  ;;  %817 = vmatpush.bf16.msra.mxu1 %v813_v20  ;;  %v894_v20 = vld [vmem:[%s1399_s4] ss:$0 sm:$0xff] }
  0x3e   : > { %p1022_p4 = pnand %p1021_p1, %p1201_p5  ;;  %p1027_p2 = por %p1026_p9, %p1025_p11 }
  0x40   : > { %377 = vadd.xlane.f32.xlu1 %v376_v9  ;;  %371 = vadd.xlane.f32.xlu0 %v370_v10  ;;  %p1023_p8 = pneg %p1022_p4 }
  0x41   : > { %533 = vmatpush.bf16.msra.mxu0 %v812_v24  ;;  %818 = vmatpush.bf16.msra.mxu1 %v812_v24 }
  0x42   : > { %387 = vadd.xlane.f32.xlu2 %v386_v11  ;;  %v893_v11 = vld [vmem:[%s1398_s3] ss:$0 sm:$0xff]  ;;  %p1028_p10 = pnand %p1027_p2, %p1023_p8 }
  0x45   : > { %534 = vmatpush.bf16.msra.mxu0 %v811_v30  ;;  %819 = vmatpush.bf16.msra.mxu1 %v811_v30 }
  0x48   : > { %393 = vadd.xlane.f32.xlu1 %v392_v14  ;;  %390 = vadd.xlane.f32.xlu0 %v389_v15 }
  0xab   : > { %v375_v17 = vpop.xlane.xlu1 %374  ;;  %v369_v18 = vpop.xlane.xlu0 %368 }
  0xac   : > { %v1273_v19 = vmul.f32 0.015625, %v369_v18  ;;  %v1281_v35 = vmul.f32 0.015625, %v375_v17 }
  0xad   : > { %v385_v21 = vpop.xlane.xlu2 %384 }
  0xae   : > { %v403_v22 = vmul.f32 %v1273_v19, %v1273_v19  ;;  %v399_v23 = vmul.f32 0.015625, %v385_v21  ;;  %v405_v41 = vmul.f32 %v1281_v35, %v1281_v35  ;;  %v415_v3 = vsub.f32 %v1247_v1, %v1273_v19 }
  0xb0   : > { %v407_v25 = vsub.f32 %v399_v23, %v403_v22 }
  0xb2   : > { %v411_v26 = vmax.f32 %v407_v25, 0.0  ;;  %v417_v25 = vsub.f32 %v1245_v0, %v1281_v35  ;;  %v895_v0 = vld [vmem:[%s1397_s2] ss:$0 sm:$0xff] }
  0xb3   : > { %v378_v27 = vpop.xlane.xlu1 %377  ;;  %v372_v28 = vpop.xlane.xlu0 %371 }
  0xb4   : > { %v1277_v29 = vmul.f32 0.015625, %v372_v28  ;;  %v419_v31 = vadd.f32 1e-05, %v411_v26  ;;  %v1283_v36 = vmul.f32 0.015625, %v378_v27 }
  0xb5   : > { %v388_v32 = vpop.xlane.xlu2 %387 }
  0xb6   : > { %v404_v33 = vmul.f32 %v1277_v29, %v1277_v29  ;;  %898 = vrsqrt.f32 %v419_v31  ;;  %v400_v34 = vmul.f32 0.015625, %v388_v32  ;;  %v406_v42 = vmul.f32 %v1283_v36, %v1283_v36 }
  0xb7   : > { %vm429_vm2 = vweird.f32 %v419_v31  ;;  %v416_v14 = vsub.f32 %v1255_v5, %v1277_v29  ;;  %v418_v5 = vsub.f32 %v1258_v7, %v1283_v36 }
  0xb8   : > { %v408_v37 = vsub.f32 %v400_v34, %v404_v33 }
  0xba   : > { %v412_v38 = vmax.f32 %v408_v37, 0.0 }
  0xbb   : > { %v394_v39 = vpop.xlane.xlu1 %393  ;;  %v391_v40 = vpop.xlane.xlu0 %390 }
  0xbc   : > { %v402_v43 = vmul.f32 0.015625, %v394_v39  ;;  %v401_v44 = vmul.f32 0.015625, %v391_v40  ;;  %v899_v45 = vpop.eup %898  ;;  %v420_v46 = vadd.f32 1e-05, %v412_v38 }
  0xbd   : > { %v424_v47 = vmul.f32 %v899_v45, %v419_v31  ;;  %vm430_vm1 = vweird.f32 %v899_v45 }
  0xbe   : > { %v410_v48 = vsub.f32 %v402_v43, %v406_v42  ;;  %v409_v49 = vsub.f32 %v401_v44, %v405_v41  ;;  %900 = vrsqrt.f32 %v420_v46  ;;  %vm431_vm3 = vmor %vm429_vm2, %vm430_vm1  ;;  %vm439_vm5 = vweird.f32 %v420_v46 }
  0xbf   : > { %v425_v50 = vmul.f32 %v899_v45, %v424_v47 }
  0xc0   : > { %v414_v51 = vmax.f32 %v410_v48, 0.0  ;;  %v413_v52 = vmax.f32 %v409_v49, 0.0 }
  0xc1   : > { %v426_v53 = vmul.f32 0.5, %v425_v50 }
  0xc2   : > { %v422_v54 = vadd.f32 1e-05, %v414_v51  ;;  %v421_v55 = vadd.f32 1e-05, %v413_v52 }
  0xc3   : > { %v427_v56 = vsub.f32 1.5, %v426_v53 }
  0xc4   : > { %902 = vrsqrt.f32 %v422_v54  ;;  %v901_v57 = vpop.eup %900  ;;  %vm459_vm9 = vweird.f32 %v422_v54  ;;  %vm449_vm11 = vweird.f32 %v421_v55 }
  0xc5   : > { %904 = vrsqrt.f32 %v421_v55  ;;  %v428_v58 = vmul.f32 %v899_v45, %v427_v56  ;;  %v434_v59 = vmul.f32 %v901_v57, %v420_v46  ;;  %vm440_vm4 = vweird.f32 %v901_v57 }
  0xc6   : > { %vm441_vm6 = vmor %vm439_vm5, %vm440_vm4 }
  0xc7   : > { %v435_v60 = vmul.f32 %v901_v57, %v434_v59  ;;  %v432_v63 = vsel %vm431_vm3, %v899_v45, %v428_v58 }
  0xc8   : > { %v463_v10 = vmul.f32 %v432_v63, %v415_v3 }
  0xc9   : > { %v436_v62 = vmul.f32 0.5, %v435_v60 }
  0xca   : > { %v903_v61 = vpop.eup %902  ;;  %v471_v19 = vmul.f32 %v893_v11, %v463_v10 }
  0xcb   : > { %v905_v2 = vpop.eup %904  ;;  %v454_v4 = vmul.f32 %v903_v61, %v422_v54  ;;  %v437_v6 = vsub.f32 1.5, %v436_v62  ;;  %vm460_vm7 = vweird.f32 %v903_v61 }
  0xcc   : > { %v444_v8 = vmul.f32 %v905_v2, %v421_v55  ;;  %vm450_vm8 = vweird.f32 %v905_v2  ;;  %vm461_vm10 = vmor %vm459_vm9, %vm460_vm7  ;;  %v479_v26 = vadd.f32 %v894_v20, %v471_v19 }
  0xcd   : > { %v455_v9 = vmul.f32 %v903_v61, %v454_v4  ;;  %v438_v12 = vmul.f32 %v901_v57, %v437_v6  ;;  %vm451_vm12 = vmor %vm449_vm11, %vm450_vm8 }
  0xce   : > { %v445_v13 = vmul.f32 %v905_v2, %v444_v8 }
  0xcf   : > { %v456_v15 = vmul.f32 0.5, %v455_v9  ;;  %v442_v1 = vsel %vm441_vm6, %v901_v57, %v438_v12 }
  0xd0   : > { %v446_v16 = vmul.f32 0.5, %v445_v13  ;;  %v464_v18 = vmul.f32 %v442_v1, %v416_v14 }
  0xd1   : > { %v457_v17 = vsub.f32 1.5, %v456_v15 }
  0xd2   : > { %v447_v21 = vsub.f32 1.5, %v446_v16  ;;  %v472_v23 = vmul.f32 %v893_v11, %v464_v18 }
  0xd3   : > { %v458_v22 = vmul.f32 %v903_v61, %v457_v17 }
  0xd4   : > { %v448_v24 = vmul.f32 %v905_v2, %v447_v21  ;;  %v480_v27 = vadd.f32 %v894_v20, %v472_v23 }
  0xd5   : > { %v462_v28 = vsel %vm461_vm10, %v903_v61, %v458_v22 }
  0xd6   : > { %v452_v29 = vsel %vm451_vm12, %v905_v2, %v448_v24  ;;  %v466_v30 = vmul.f32 %v462_v28, %v418_v5  ;;  %v483_v31 = vpack.c.bf16 %v480_v27, %v479_v26  ;;  %v896_v24 = vld [vmem:[%s1400_s5] ss:$0 sm:$0xff] }
  0xd7   : > { %v465_v32 = vmul.f32 %v452_v29, %v417_v25  ;;  %v897_v28 = vld [vmem:[%s1401_s6] ss:$0 sm:$0xff] }
  0xd8   : > { %v474_v33 = vmul.f32 %v893_v11, %v466_v30  ;;  %803 = vmatmul.msk.bf16.vlgmr.msra.gmra.mxu0 %vm366_vm0, %v483_v31 }
  0xd9   : > { %v473_v34 = vmul.f32 %v893_v11, %v465_v32 }
  0xda   : > { %v482_v37 = vadd.f32 %v894_v20, %v474_v33  ;;  %v654_v33 = vld [vmem:[#allocation7] sm:$0xff] }
  0xdb   : > { %v481_v7 = vadd.f32 %v894_v20, %v473_v34 }
  0xdd   : > { %v484_v36 = vpack.c.bf16 %v482_v37, %v481_v7 }
  0xdf   : > { %804 = vmatmul.msk.bf16.vlgmr.msra.gmra.mxu1 %vm366_vm0, %v484_v36 }
 0x155   : > { %v536_v35 = vpop.f32.mrf.mxu0 }
 0x156   : > { %v1308_v38 = vadd.f32 %v895_v0, %v536_v35 }
 0x158   : > { %546 = vadd.xlane.f32.xlu2 %v1308_v38  ;;  %v554_v39 = vmul.f32 %v1308_v38, %v1308_v38 }
 0x15a   : > { %558 = vadd.xlane.f32.xlu0 %v554_v39 }
 0x15c   : > { %v541_v40 = vpop.f32.mrf.mxu1 }
 0x15d   : > { %v1313_v41 = vadd.f32 %v895_v0, %v541_v40  ;;  %v538_v42 = vpop.f32.mrf.mxu0 }
 0x15e   : > { %v1316_v43 = vadd.f32 %v895_v0, %v538_v42 }
 0x15f   : > { %550 = vadd.xlane.f32.xlu1 %v1313_v41  ;;  %v556_v48 = vmul.f32 %v1313_v41, %v1313_v41 }
 0x160   : > { %v555_v46 = vmul.f32 %v1316_v43, %v1316_v43 }
 0x162   : > { %548 = vadd.xlane.f32.xlu0 %v1316_v43 }
 0x164   : > { %v543_v44 = vpop.f32.mrf.mxu1 }
 0x165   : > { %v1319_v45 = vadd.f32 %v895_v0, %v543_v44 }
 0x167   : > { %552 = vadd.xlane.f32.xlu2 %v1319_v45  ;;  %560 = vadd.xlane.f32.xlu1 %v555_v46  ;;  %v557_v47 = vmul.f32 %v1319_v45, %v1319_v45 }
 0x16a   : > { %564 = vadd.xlane.f32.xlu0 %v557_v47 }
 0x16f   : > { %562 = vadd.xlane.f32.xlu2 %v556_v48 }
 0x1cb   : > { %v547_v49 = vpop.xlane.xlu2 %546 }
 0x1cc   : > { %v566_v50 = vmul.f32 0.03125, %v547_v49 }
 0x1cd   : > { %v559_v51 = vpop.xlane.xlu0 %558 }
 0x1ce   : > { %v574_v52 = vmul.f32 %v566_v50, %v566_v50  ;;  %v570_v53 = vmul.f32 0.03125, %v559_v51  ;;  %v586_v5 = vsub.f32 %v1308_v38, %v566_v50 }
 0x1d0   : > { %v578_v54 = vsub.f32 %v570_v53, %v574_v52 }
 0x1d2   : > { %v551_v55 = vpop.xlane.xlu1 %550  ;;  %v582_v56 = vmax.f32 %v578_v54, 0.0 }
 0x1d3   : > { %v1334_v9 = vmul.f32 0.03125, %v551_v55 }
 0x1d4   : > { %v590_v57 = vadd.f32 1e-05, %v582_v56  ;;  %v655_v56 = vld [vmem:[#allocation7 + $0x8] sm:$0xff] }
 0x1d5   : > { %v549_v58 = vpop.xlane.xlu0 %548  ;;  %v576_v17 = vmul.f32 %v1334_v9, %v1334_v9 }
 0x1d6   : > { %906 = vrsqrt.f32 %v590_v57  ;;  %v1328_v59 = vmul.f32 0.03125, %v549_v58  ;;  %vm600_vm14 = vweird.f32 %v590_v57 }
 0x1d8   : > { %v575_v62 = vmul.f32 %v1328_v59, %v1328_v59  ;;  %v587_v47 = vsub.f32 %v1316_v43, %v1328_v59 }
 0x1da   : > { %v553_v60 = vpop.xlane.xlu2 %552  ;;  %v561_v61 = vpop.xlane.xlu1 %560 }
 0x1db   : > { %v1332_v63 = vmul.f32 0.03125, %v553_v60  ;;  %v571_v2 = vmul.f32 0.03125, %v561_v61  ;;  %v588_v61 = vsub.f32 %v1313_v41, %v1334_v9  ;;  %v656_v41 = vld [vmem:[#allocation7 + $0x10] sm:$0xff] }
 0x1dc   : > { %v907_v3 = vpop.eup %906 }
 0x1dd   : > { %v579_v4 = vsub.f32 %v571_v2, %v575_v62  ;;  %v595_v6 = vmul.f32 %v907_v3, %v590_v57  ;;  %v565_v8 = vpop.xlane.xlu0 %564  ;;  %v577_v10 = vmul.f32 %v1332_v63, %v1332_v63  ;;  %vm601_vm13 = vweird.f32 %v907_v3 }
 0x1de   : > { %v573_v12 = vmul.f32 0.03125, %v565_v8  ;;  %vm602_vm15 = vmor %vm600_vm14, %vm601_vm13  ;;  %v589_v54 = vsub.f32 %v1319_v45, %v1332_v63  ;;  %v657_v45 = vld [vmem:[#allocation7 + $0x18] sm:$0xff] }
 0x1df   : > { %v583_v11 = vmax.f32 %v579_v4, 0.0  ;;  %v596_v13 = vmul.f32 %v907_v3, %v595_v6 }
 0x1e0   : > { %v581_v15 = vsub.f32 %v573_v12, %v577_v10 }
 0x1e1   : > { %v591_v14 = vadd.f32 1e-05, %v583_v11  ;;  %v597_v16 = vmul.f32 0.5, %v596_v13 }
 0x1e2   : > { %v563_v1 = vpop.xlane.xlu2 %562  ;;  %v585_v18 = vmax.f32 %v581_v15, 0.0 }
 0x1e3   : > { %908 = vrsqrt.f32 %v591_v14  ;;  %v572_v19 = vmul.f32 0.03125, %v563_v1  ;;  %v598_v20 = vsub.f32 1.5, %v597_v16  ;;  %vm610_vm1 = vweird.f32 %v591_v14 }
 0x1e4   : > { %v593_v21 = vadd.f32 1e-05, %v585_v18 }
 0x1e5   : > { %v580_v22 = vsub.f32 %v572_v19, %v576_v17  ;;  %v599_v23 = vmul.f32 %v907_v3, %v598_v20 }
 0x1e6   : > { %910 = vrsqrt.f32 %v593_v21  ;;  %vm630_vm4 = vweird.f32 %v593_v21 }
 0x1e7   : > { %v584_v25 = vmax.f32 %v580_v22, 0.0  ;;  %v603_v26 = vsel %vm602_vm15, %v907_v3, %v599_v23 }
 0x1e8   : > { %v634_v29 = vmul.f32 %v603_v26, %v586_v5 }
 0x1e9   : > { %v909_v27 = vpop.eup %908  ;;  %v592_v30 = vadd.f32 1e-05, %v584_v25 }
 0x1ea   : > { %v605_v31 = vmul.f32 %v909_v27, %v591_v14  ;;  %v642_v32 = vmul.f32 %v896_v24, %v634_v29  ;;  %vm611_vm0 = vweird.f32 %v909_v27 }
 0x1eb   : > { %912 = vrsqrt.f32 %v592_v30  ;;  %vm612_vm2 = vmor %vm610_vm1, %vm611_vm0  ;;  %vm620_vm7 = vweird.f32 %v592_v30 }
 0x1ec   : > { %v606_v34 = vmul.f32 %v909_v27, %v605_v31  ;;  %v911_v37 = vpop.eup %910  ;;  %v650_v7 = vadd.f32 %v897_v28, %v642_v32 }
 0x1ed   : > { %v625_v0 = vmul.f32 %v911_v37, %v593_v21  ;;  %vm631_vm3 = vweird.f32 %v911_v37 }
 0x1ee   : > { %v607_v36 = vmul.f32 0.5, %v606_v34  ;;  %v658_v35 = vadd.f32 %v654_v33, %v650_v7  ;;  %vm632_vm5 = vmor %vm630_vm4, %vm631_vm3 }
 0x1ef   : > { %v626_v39 = vmul.f32 %v911_v37, %v625_v0 }
 0x1f0   : > { %v608_v38 = vsub.f32 1.5, %v607_v36  ;;  %662 = vst [vmem:[%s1349_s25] sm:$0xff] %v658_v35 }
 0x1f1   : > { %v913_v40 = vpop.eup %912  ;;  %v627_v44 = vmul.f32 0.5, %v626_v39 }
 0x1f2   : > { %v609_v42 = vmul.f32 %v909_v27, %v608_v38  ;;  %v615_v46 = vmul.f32 %v913_v40, %v592_v30  ;;  %vm621_vm6 = vweird.f32 %v913_v40 }
 0x1f3   : > { %v628_v49 = vsub.f32 1.5, %v627_v44  ;;  %vm622_vm8 = vmor %vm620_vm7, %vm621_vm6 }
 0x1f4   : > { %v613_v48 = vsel %vm612_vm2, %v909_v27, %v609_v42  ;;  %v616_v50 = vmul.f32 %v913_v40, %v615_v46 }
 0x1f5   : > { %v635_v51 = vmul.f32 %v613_v48, %v587_v47  ;;  %v629_v52 = vmul.f32 %v911_v37, %v628_v49 }
 0x1f6   : > { %v617_v53 = vmul.f32 0.5, %v616_v50 }
 0x1f7   : > { %v643_v55 = vmul.f32 %v896_v24, %v635_v51  ;;  %v633_v57 = vsel %vm632_vm5, %v911_v37, %v629_v52 }
 0x1f8   : > { %v618_v58 = vsub.f32 1.5, %v617_v53  ;;  %v637_v59 = vmul.f32 %v633_v57, %v589_v54 }
 0x1f9   : > { %v651_v43 = vadd.f32 %v897_v28, %v643_v55 }
 0x1fa   : > { %v619_v60 = vmul.f32 %v913_v40, %v618_v58  ;;  %v645_v2 = vmul.f32 %v896_v24, %v637_v59 }
 0x1fb   : > { %v659_v62 = vadd.f32 %v655_v56, %v651_v43 }
 0x1fc   : > { %v623_v63 = vsel %vm622_vm8, %v913_v40, %v619_v60  ;;  %v653_v3 = vadd.f32 %v897_v28, %v645_v2 }
 0x1fd   : > { %663 = vst [vmem:[%s1349_s25 + $0x8] sm:$0xff] %v659_v62  ;;  %v636_v4 = vmul.f32 %v623_v63, %v588_v61 }
 0x1fe   : > { %v661_v6 = vadd.f32 %v657_v45, %v653_v3 }
 0x1ff   : > { %v644_v8 = vmul.f32 %v896_v24, %v636_v4 }
 0x200   : > { %665 = vst [vmem:[%s1349_s25 + $0x18] sm:$0xff] %v661_v6 }
 0x201   : > { %v652_v9 = vadd.f32 %v897_v28, %v644_v8 }
 0x203   : > { %v660_v10 = vadd.f32 %v656_v41, %v652_v9 }
 0x205   : > { %664 = vst [vmem:[%s1349_s25 + $0x10] sm:$0xff] %v660_v10 }
 0x206   : > { %1031 = shalt.err (!%p1028_p10)
}
 0x207   : > { %s1082_s21 = smov 128   ;;  %s1083_s25 = smov 8  }
 0x208   : > { %830 = dma.vmem_to_hbm [thread:$0]  (%p1201_p5), %s680_s9, 512, %s682_s16, %s667_s26, %s1082_s21, %s1082_s21, %s1083_s25  }
 0x209 PF: > { %s696_s1 = sand.u32 1, %s1062_s27   ;;  %p1417_p12 = scmp.ge.s32.totalorder %s1074_s30, 2 }
 0x20a   : > { %s697_s7 = scalar_lea.sflag [#allocation4], %s696_s1 }
 0x20b   : > { %p844_p13 = pnand %p1417_p12, %p1164_p6 }
 0x20d   : > { %p845_p0 = pneg %p844_p13 }
 0x20f   : > { %1057 = dma.done.wait (%p845_p0), %s697_s7, 512  }
 0x210   : > { %1059 = vsyncadd (%p845_p0), %s697_s7, 4294966784  ;;  %p22_p3 = scmp.ge.s32.totalorder %s1188_s13, 4   ;;  %s1418_s27 = smov %s1066_s28 }
 0x211   : > { %s1419_s28 = smov %s1070_s29  ;;  %s1420_s29 = smov %s1197_s15 }
 0x212   : > { %s1421_s30 = smov %s1188_s13  ;;  %24 = sbr.rel (!%p22_p3) target bundleno = 9 (0x9), region = 105 }
 0x217   :  { %703 = vsyncpa [#allocation3], 1 }
 0x218   :  { %705 = vsyncpa [#allocation3 + $0x1], 1 }
 0x219   :  { %706 = vsyncpa [#allocation6], 1 }
 0x21a   :  { %707 = vsyncpa [#allocation4], 1 }
 0x21b   :  { %709 = vsyncpa [#allocation4 + $0x1], 1 }

</bundles_post_ra>
